<compile_context>
chip_gen: v5e
topology: v5e:2x2
jax: 0.10.0
libtpu: 0.0.40
codegen_flags: <defaults>
</compile_context>

<pallas_src>
import functools

import jax
import jax.numpy as jnp
from jax.experimental import pallas as pl
from jax.experimental.pallas import tpu as pltpu


def _global_avg_kernel(x_ref, o_ref, acc_ref, *, inv_n, n_tile):
    """One (row_tile, n_tile) step of a running-sum reduction over N."""
    k = pl.program_id(1)  # reduction step along (padded) N

    @pl.when(k == 0)
    def _():
        acc_ref[...] = jnp.zeros_like(acc_ref)

    num_chunks = n_tile // 128  # n_tile is always a multiple of 128

    # Per-chunk ref slices (bounded live ranges; the f32 upcast happens one
    # 128-lane slab at a time), accumulated into a few independent partials
    # so the adds don't form one long serial VALU chain.
    n_parts = min(4, num_chunks)
    parts = [None] * n_parts
    for j in range(num_chunks):
        chunk = x_ref[:, j * 128:(j + 1) * 128].astype(jnp.float32)
        p = j % n_parts
        parts[p] = chunk if parts[p] is None else parts[p] + chunk
    total = parts[0]
    for extra in parts[1:]:
        total = total + extra
    acc_ref[...] = acc_ref[...] + total

    @pl.when(k == pl.num_programs(1) - 1)
    def _():
        # Single cross-lane reduce at the very end, then the 1/N scale.
        row_sum = jnp.sum(acc_ref[...], axis=-1, keepdims=True)  # (row_tile, 1)
        o_ref[...] = (row_sum * inv_n).astype(o_ref.dtype)


def _vmem_budgets():
    """(per_buffer_bytes, vmem_limit_bytes) sized to this chip generation."""
    try:
        cap = getattr(pltpu.get_tpu_info(), "vmem_capacity_bytes", None)
    except Exception:  # query unavailable -> stay conservative (v7x-safe)
        cap = None
    if cap is not None and cap >= 96 * 1024 * 1024:
        # v5e / v6e: 128 MiB physical VMEM -> bigger streaming blocks.
        return 16 * 1024 * 1024, 80 * 1024 * 1024
    # v7x (64 MiB physical VMEM) or unknown.
    return 12 * 1024 * 1024, 44 * 1024 * 1024


def _pick_row_tile(rows, itemsize):
    # Sub-32-bit dtypes pack along sublanes: keep blocks at least one full
    # packed vreg tall. Cap at 128 to keep accumulator vreg pressure low.
    min_tile = {4: 8, 2: 16, 1: 32}.get(itemsize, 8)
    candidates = [c for c in (128, 64, 32, 16, 8) if c >= min_tile]
    # Prefer >= 2 row blocks so the "parallel" axis can feed both v7x cores.
    for cand in candidates:
        if rows % cand == 0 and rows // cand >= 2:
            return cand
    for cand in candidates:
        if rows % cand == 0:
            return cand
    return rows  # full extent is always a legal block dim


def _pick_n_tile(n_padded, row_tile, itemsize, per_buffer_bytes):
    # Largest 128-multiple that divides the (128-padded) N and fits the
    # per-buffer budget; 128 always divides n_padded so a divisor exists.
    budget_cols = (per_buffer_bytes // max(1, row_tile * itemsize)) // 128 * 128
    budget_cols = max(128, min(budget_cols, n_padded))
    for cand in range(budget_cols, 127, -128):
        if n_padded % cand == 0:
            return cand
    return 128


def global_avg_pool_1d(x, *, per_buffer_bytes=None, vmem_limit_bytes=None):
    """Equivalent of torch.mean(x, dim=-1) for x of shape (B, C, N)."""
    # TODO(synk): the nn.Module's `dim` buffer is honored as a static -1 (last
    # axis); a runtime-dynamic reduction axis has no clean Pallas equivalent.
    B, C, N = x.shape
    rows = B * C
    itemsize = jnp.dtype(x.dtype).itemsize

    default_buf, default_limit = _vmem_budgets()
    if per_buffer_bytes is None:
        per_buffer_bytes = default_buf
    if vmem_limit_bytes is None:
        vmem_limit_bytes = default_limit

    x2 = x.reshape(rows, N)  # dense 2-D layout, no sublane padding waste

    row_tile = _pick_row_tile(rows, itemsize)
    n_padded = pl.cdiv(N, 128) * 128
    n_tile = _pick_n_tile(n_padded, row_tile, itemsize, per_buffer_bytes)

    if n_padded != N:
        # Zero-pad the ragged tail (< 128 cols); inv_n uses the original N so
        # the padded zeros never bias the mean.
        x2 = jnp.pad(x2, ((0, 0), (0, n_padded - N)))

    grid = (rows // row_tile, n_padded // n_tile)

    out = pl.pallas_call(
        functools.partial(_global_avg_kernel, inv_n=1.0 / N, n_tile=n_tile),
        out_shape=jax.ShapeDtypeStruct((rows, 1), x.dtype),
        grid_spec=pltpu.PrefetchScalarGridSpec(
            num_scalar_prefetch=0,
            grid=grid,
            in_specs=[pl.BlockSpec((row_tile, n_tile), lambda r, k: (r, k))],
            # Output block is resident across the reduction axis.
            out_specs=pl.BlockSpec((row_tile, 1), lambda r, k: (r, 0)),
            scratch_shapes=[pltpu.VMEM((row_tile, 128), jnp.float32)],
        ),
        compiler_params=pltpu.CompilerParams(
            dimension_semantics=("parallel", "arbitrary"),
            vmem_limit_bytes=vmem_limit_bytes,
        ),
    )(x2)

    return out.reshape(B, C)


if __name__ == "__main__":
    # Small point-cloud-like feature map: (batch, channels, points).
    B, C, N = 2, 4, 256
    x = jax.random.normal(jax.random.PRNGKey(0), (B, C, N), dtype=jnp.float32)
    out = jax.block_until_ready(global_avg_pool_1d(x))
    ref = jnp.mean(x, axis=-1)
    assert out.shape == (B, C)
    assert jnp.allclose(out, ref, rtol=1e-5, atol=1e-5), "mismatch vs reference mean"

    # Force a multi-step reduction (small per-buffer budget) to exercise the
    # cross-grid-step accumulator and a 2-block parallel rows axis.
    B2, C2, N2 = 4, 32, 2048
    x2 = jax.random.normal(jax.random.PRNGKey(1), (B2, C2, N2), dtype=jnp.float32)
    out2 = jax.block_until_ready(
        global_avg_pool_1d(x2, per_buffer_bytes=256 * 1024))
    ref2 = jnp.mean(x2, axis=-1)
    assert out2.shape == (B2, C2)
    assert jnp.allclose(out2, ref2, rtol=1e-5, atol=1e-5), "mismatch (tiled path)"

    # Ragged N (not a multiple of 128): zero-padded tail, exact 1/N scale.
    B3, C3, N3 = 2, 4, 300
    x3 = jax.random.normal(jax.random.PRNGKey(2), (B3, C3, N3), dtype=jnp.float32)
    out3 = jax.block_until_ready(global_avg_pool_1d(x3))
    ref3 = jnp.mean(x3, axis=-1)
    assert out3.shape == (B3, C3)
    assert jnp.allclose(out3, ref3, rtol=1e-5, atol=1e-5), "mismatch (ragged N)"

    print("KERNEL_OK")
</pallas_src>

<mosaic_0001>
module attributes {stable_mosaic.version = 11 : i64} {
  func.func @_global_avg_kernel(%arg0: i32, %arg1: i32, %arg2: memref<8x256xf32, #tpu.memory_space<vmem>>, %arg3: memref<8x1xf32, #tpu.memory_space<vmem>>, %arg4: memref<8x128xf32, #tpu.memory_space<vmem>>) attributes {dimension_semantics = [#tpu.dimension_semantics<parallel>, #tpu.dimension_semantics<arbitrary>], iteration_bounds = array<i64: 1, 1>, scalar_prefetch = 0 : i64, scratch_operands = 1 : i64, tpu.core_type = #tpu.core_type<tc>, window_params = [{transform_indices = @transform_0, window_bounds = array<i64: 8, 256>}, {transform_indices = @transform_1, window_bounds = array<i64: 8, 1>}]} {
    %c0_i32 = arith.constant 0 : i32
    %0 = arith.cmpi eq, %arg1, %c0_i32 : i32
    %1 = arith.extui %0 : i1 to i32
    %c0_i32_0 = arith.constant 0 : i32
    %2 = arith.cmpi ne, %1, %c0_i32_0 : i32
    scf.if %2 {
      %cst = arith.constant 0.000000e+00 : f32
      %12 = vector.broadcast %cst : f32 to vector<8x128xf32>
      %c0_9 = arith.constant 0 : index
      %c0_10 = arith.constant 0 : index
      %13 = vector.load %arg4[%c0_9, %c0_10] : memref<8x128xf32, #tpu.memory_space<vmem>>, vector<8x128xf32>
      tpu.vector_store %arg4[%c0_9, %c0_10], %12 {strides = array<i32>} : memref<8x128xf32, #tpu.memory_space<vmem>>, vector<8x128xf32>,
    } else {
    }
    %c0 = arith.constant 0 : index
    %c0_1 = arith.constant 0 : index
    %3 = vector.load %arg2[%c0, %c0_1] : memref<8x256xf32, #tpu.memory_space<vmem>>, vector<8x128xf32>
    %c0_2 = arith.constant 0 : index
    %c128 = arith.constant 128 : index
    %4 = vector.load %arg2[%c0_2, %c128] : memref<8x256xf32, #tpu.memory_space<vmem>>, vector<8x128xf32>
    %5 = arith.addf %3, %4 : vector<8x128xf32>
    %c0_3 = arith.constant 0 : index
    %c0_4 = arith.constant 0 : index
    %6 = vector.load %arg4[%c0_3, %c0_4] : memref<8x128xf32, #tpu.memory_space<vmem>>, vector<8x128xf32>
    %7 = arith.addf %6, %5 : vector<8x128xf32>
    %c0_5 = arith.constant 0 : index
    %c0_6 = arith.constant 0 : index
    %8 = vector.load %arg4[%c0_5, %c0_6] : memref<8x128xf32, #tpu.memory_space<vmem>>, vector<8x128xf32>
    tpu.vector_store %arg4[%c0_5, %c0_6], %7 {strides = array<i32>} : memref<8x128xf32, #tpu.memory_space<vmem>>, vector<8x128xf32>,
    %c0_i32_7 = arith.constant 0 : i32
    %9 = arith.cmpi eq, %arg1, %c0_i32_7 : i32
    %10 = arith.extui %9 : i1 to i32
    %c0_i32_8 = arith.constant 0 : i32
    %11 = arith.cmpi ne, %10, %c0_i32_8 : i32
    scf.if %11 {
      %c0_9 = arith.constant 0 : index
      %c0_10 = arith.constant 0 : index
      %12 = vector.load %arg4[%c0_9, %c0_10] : memref<8x128xf32, #tpu.memory_space<vmem>>, vector<8x128xf32>
      %cst = arith.constant dense<0.000000e+00> : vector<8xf32>
      %13 = vector.multi_reduction <add>, %12, %cst [1] : vector<8x128xf32> to vector<8xf32>
      %14 = vector.shape_cast %13 : vector<8xf32> to vector<8x1xf32>
      %cst_11 = arith.constant 3.906250e-03 : f32
      %15 = vector.broadcast %cst_11 : f32 to vector<8x1xf32>
      %16 = arith.mulf %14, %15 : vector<8x1xf32>
      %c0_12 = arith.constant 0 : index
      %c0_13 = arith.constant 0 : index
      %17 = vector.load %arg3[%c0_12, %c0_13] : memref<8x1xf32, #tpu.memory_space<vmem>>, vector<8x1xf32>
      tpu.vector_store %arg3[%c0_12, %c0_13], %16 {strides = array<i32>} : memref<8x1xf32, #tpu.memory_space<vmem>>, vector<8x1xf32>,
    } else {
    }
    return
  }
  func.func @transform_0(%arg0: i32, %arg1: i32) -> (i32, i32) {
    %c0_i32 = arith.constant 0 : i32
    return %arg0, %arg1 : i32, i32
  }
  func.func @transform_1(%arg0: i32, %arg1: i32) -> (i32, i32) {
    %c0_i32 = arith.constant 0 : i32
    %c0_i32_0 = arith.constant 0 : i32
    return %arg0, %c0_i32 : i32, i32
  }
}

</mosaic_0001>

<bundles_post_ra>
// kernel: tpu_custom_call.1
= control target key start
LH: loop header
LB: loop body
LE: loop exit
PB: predicated region body
PF: predicated region fallthrough
CT: control target
= control target key end

     0   :  { %6 = vsyncpa [#allocation4], 0  ;;  %s74_s9 = smov [#allocation3]   ;;  %s91_s0 = inlined_call_operand.hbm [shape: f32[8,256], index: 0, kind: input, shape index: {}]   ;;  %s92_s1 = inlined_call_operand.vmem [shape: f32[8,1], index: 1, kind: output, shape index: {}]  }
   0x1   :  { %s12_s8 = sshll.u32 %s91_s0, 4  ;;  %s14_s10 = sshll.u32 %s74_s9, 4  ;;  %s13_s8 = int_to_ptr.hbm [resolvable:$true] %s12_s8  ;;  %s15_s10 = int_to_ptr.vmem [resolvable:$true] %s14_s10 }
   0x2   :  { %17 = dma.hbm_to_vmem [thread:$0]  %s13_s8, 256, %s15_s10, [#allocation4]  }
   0x3   :  { %72 = dma.done.wait [#allocation4], 256  }
   0x4   :  { %73 = vsyncadd [#allocation4], 4294967040  ;;  %v27_v0 = vld [vmem:[#allocation3] sm:$0xff]  ;;  %v28_v1 = vld [vmem:[#allocation3 + $0x8] sm:$0xff]  ;;  %vm40_vm0 = vcmask 7168  }
   0x5   :  { %v29_v2 = vadd.f32 %v28_v1, %v27_v0 }
   0x7   :  { %37 = vadd.xlane.f32.xlu0 %v29_v2 }
  0x7a   :  { %v38_v3 = vpop.xlane.xlu0 %37 }
  0x7b   :  { %v39_v4 = vmul.f32 0.00390625, %v38_v3 }
  0x7d   :  { %41 = vst.msk [vmem:[%s92_s1] sm:$0xff] %vm40_vm0, %v39_v4 }
  0x7e   :  { %46 = vsyncpa [#allocation4], 1 }

</bundles_post_ra>
